<compile_context>
chip_gen: v7x
topology: tpu7x:2x2x1
jax: 0.10.0
libtpu: 0.0.40
codegen_flags: <defaults>
</compile_context>

<pallas_src>
import functools

import jax
import jax.numpy as jnp
from jax.experimental import pallas as pl
from jax.experimental.pallas import tpu as pltpu

_NEG_BIG = -1e30  # additive mask for padded (nonexistent) logit columns


# ----------------------------------------------------------------------------- kernel
def _classifier_kernel(x_ref, w1_ref, w11_ref, w12_ref, w2_ref, pack_ref, y_ref):
    """Whole MLP hot path: 4 matmuls + per-column dequant / BN-shift + ReLU, gridless.

    x_ref   : (Bp, F)    f32
    w1_ref  : (F, F)     int8 (or bf16), BN1 scale folded into columns
    w11_ref : (F, H)     int8 (or bf16), BN1_1 scale folded
    w12_ref : (H, H)     int8 (or bf16), BN1_2 scale folded
    w2_ref  : (H, Cp)    int8 (or bf16), class dim zero-padded to 128-multiple
    pack_ref: (8, Cp)    f32  rows: [shift1, shift1_1, shift1_2, qs1, qs1_1, qs1_2, qs2, class_mask]
    y_ref   : (Bp, Cp)   f32  logits (padded cols hold -1e30)
    """
    F = w1_ref.shape[0]        # feat_dim
    H = w12_ref.shape[0]       # feat_dim // 2

    x = x_ref[...].astype(jnp.bfloat16)

    shift1  = pack_ref[0:1, :F]
    shift11 = pack_ref[1:2, :H]
    shift12 = pack_ref[2:3, :H]
    qs1     = pack_ref[3:4, :F]
    qs11    = pack_ref[4:5, :H]
    qs12    = pack_ref[5:6, :H]
    qs2     = pack_ref[6:7, :]
    cls_msk = pack_ref[7:8, :]

    # fc1 -> bn1 -> relu   (f32 accumulate; dequant scale + BN shift in f32 epilogue)
    h = jnp.dot(x, w1_ref[...].astype(jnp.bfloat16),
                preferred_element_type=jnp.float32)
    h = jnp.maximum(h * qs1 + shift1, 0.0)

    # fc1_1 -> bn1_1 -> relu
    h = jnp.dot(h.astype(jnp.bfloat16), w11_ref[...].astype(jnp.bfloat16),
                preferred_element_type=jnp.float32)
    h = jnp.maximum(h * qs11 + shift11, 0.0)

    # fc1_2 -> bn1_2 -> relu
    h = jnp.dot(h.astype(jnp.bfloat16), w12_ref[...].astype(jnp.bfloat16),
                preferred_element_type=jnp.float32)
    h = jnp.maximum(h * qs12 + shift12, 0.0)

    # fc2 (bias=False); padded class columns masked to a large negative value.
    y = jnp.dot(h.astype(jnp.bfloat16), w2_ref[...].astype(jnp.bfloat16),
                preferred_element_type=jnp.float32)
    y_ref[...] = y * qs2 + cls_msk


# --------------------------------------------------------------------- param plumbing
def _fold_bn(gamma, beta, running_mean, running_var, eps=1e-5):
    """Inference-mode BatchNorm1d -> per-feature (scale, shift)."""
    scale = gamma / jnp.sqrt(running_var + eps)
    shift = beta - running_mean * scale
    return scale, shift


def _quantize_per_col(w, quantize):
    """w: (in, out) f32 -> (stored weight, per-output-column f32 dequant scale)."""
    if not quantize:
        return w.astype(jnp.bfloat16), jnp.ones((w.shape[1],), jnp.float32)
    amax = jnp.max(jnp.abs(w), axis=0)
    qs = jnp.maximum(amax, 1e-12) / 127.0
    w_q = jnp.clip(jnp.round(w / qs[None, :]), -127.0, 127.0).astype(jnp.int8)
    return w_q, qs.astype(jnp.float32)


def prepare_params(raw, num_classes, *, quantize_weights=True, eps=1e-5):
    """Fold inference BN into the bias-free Linears, transpose to (in, out), quantize
    per output column, pad fc2's class dim to a 128-multiple, pack epilogue vectors."""
    feat_dim = raw["fc1_w"].shape[1]            # torch Linear weight is (out, in)
    half = feat_dim // 2
    c_pad = pl.cdiv(num_classes, 128) * 128

    s1,  b1  = _fold_bn(raw["bn1_g"],   raw["bn1_b"],   raw["bn1_m"],   raw["bn1_v"],   eps)
    s11, b11 = _fold_bn(raw["bn1_1_g"], raw["bn1_1_b"], raw["bn1_1_m"], raw["bn1_1_v"], eps)
    s12, b12 = _fold_bn(raw["bn1_2_g"], raw["bn1_2_b"], raw["bn1_2_m"], raw["bn1_2_v"], eps)

    # (in, out) layout with the BN scale folded into the output columns.
    w1_f  = raw["fc1_w"].T * s1[None, :]        # (F, F)
    w11_f = raw["fc1_1_w"].T * s11[None, :]     # (F, H)
    w12_f = raw["fc1_2_w"].T * s12[None, :]     # (H, H)
    w2_f  = jnp.pad(raw["fc2_w"].T, ((0, 0), (0, c_pad - num_classes)))   # (H, Cp)

    w1,  qs1  = _quantize_per_col(w1_f,  quantize_weights)
    w11, qs11 = _quantize_per_col(w11_f, quantize_weights)
    w12, qs12 = _quantize_per_col(w12_f, quantize_weights)
    w2,  qs2  = _quantize_per_col(w2_f,  quantize_weights)

    pack = jnp.zeros((8, c_pad), jnp.float32)
    pack = pack.at[0, :feat_dim].set(b1)
    pack = pack.at[1, :half].set(b11)
    pack = pack.at[2, :half].set(b12)
    pack = pack.at[3, :feat_dim].set(qs1)
    pack = pack.at[4, :half].set(qs11)
    pack = pack.at[5, :half].set(qs12)
    pack = pack.at[6, :].set(qs2)
    pack = pack.at[7, num_classes:].set(_NEG_BIG)   # mask padded logit columns

    return {"w1": w1, "w1_1": w11, "w1_2": w12, "w2": w2, "pack": pack,
            "num_classes": num_classes, "c_pad": c_pad,
            "feat_dim": feat_dim, "half": half}


# --------------------------------------------------------------------------- forward
@functools.partial(jax.jit, static_argnames=("num_classes", "c_pad", "keep_padded"))
def _classifier_forward(x, w1, w11, w12, w2, pack, *, num_classes, c_pad, keep_padded):
    B, F = x.shape
    H = w12.shape[0]
    b_pad = pl.cdiv(B, 8) * 8                    # sublane-align the batch
    if b_pad != B:
        x = jnp.pad(x, ((0, b_pad - B), (0, 0)))

    flops = 2 * b_pad * (F * F + F * H + H * H + H * c_pad)
    bytes_accessed = (
        x.size * x.dtype.itemsize
        + sum(int(w.size) * w.dtype.itemsize for w in (w1, w11, w12, w2))
        + pack.size * 4
        + b_pad * c_pad * 4)

    vmem = pl.BlockSpec(memory_space=pltpu.MemorySpace.VMEM)
    y_pad = pl.pallas_call(
        _classifier_kernel,
        out_shape=jax.ShapeDtypeStruct((b_pad, c_pad), jnp.float32),
        in_specs=[vmem] * 6,
        out_specs=vmem,
        cost_estimate=pl.CostEstimate(
            flops=flops, bytes_accessed=bytes_accessed, transcendentals=0),
    )(x, w1, w11, w12, w2, pack)

    if keep_padded:
        return y_pad                              # (b_pad, c_pad); padded cols = -1e30
    return y_pad[:B, :num_classes]                # fused inside the same jit


def classifier_spk_forward(x, params, keep_padded=False):
    """x: (B, feat_dim) f32 (the torch.flatten(x, 1) result).
    Returns (B, num_classes) f32 logits, or the lane-dense padded logits if
    keep_padded=True (columns >= num_classes hold -1e30, safe for softmax/argmax)."""
    return _classifier_forward(
        x, params["w1"], params["w1_1"], params["w1_2"], params["w2"], params["pack"],
        num_classes=params["num_classes"], c_pad=params["c_pad"],
        keep_padded=keep_padded)


# ------------------------------------------------------------------- synthetic params
def make_raw_params(key, feat_dim=256, num_classes=580):
    """Deterministic synthetic parameters matching classifier_spk.__init__ (PyTorch
    layout: Linear weight (out, in), all Linears bias=False, BN running stats)."""
    half = feat_dim // 2
    ks = jax.random.split(key, 16)

    def lin(k, out_dim, in_dim):
        bound = 1.0 / (in_dim ** 0.5)
        return jax.random.uniform(k, (out_dim, in_dim), jnp.float32, -bound, bound)

    def bn(kg, kb, km, kv, dim):
        return {
            "g": 1.0 + 0.1 * jax.random.normal(kg, (dim,), jnp.float32),
            "b": 0.1 * jax.random.normal(kb, (dim,), jnp.float32),
            "m": 0.1 * jax.random.normal(km, (dim,), jnp.float32),
            "v": 1.0 + 0.1 * jax.random.uniform(kv, (dim,), jnp.float32),
        }

    bn1 = bn(ks[1], ks[2], ks[3], ks[4], feat_dim)
    bn1_1 = bn(ks[6], ks[7], ks[8], ks[9], half)
    bn1_2 = bn(ks[11], ks[12], ks[13], ks[14], half)

    return {
        "fc1_w": lin(ks[0], feat_dim, feat_dim),
        "bn1_g": bn1["g"], "bn1_b": bn1["b"], "bn1_m": bn1["m"], "bn1_v": bn1["v"],
        "fc1_1_w": lin(ks[5], half, feat_dim),
        "bn1_1_g": bn1_1["g"], "bn1_1_b": bn1_1["b"],
        "bn1_1_m": bn1_1["m"], "bn1_1_v": bn1_1["v"],
        "fc1_2_w": lin(ks[10], half, half),
        "bn1_2_g": bn1_2["g"], "bn1_2_b": bn1_2["b"],
        "bn1_2_m": bn1_2["m"], "bn1_2_v": bn1_2["v"],
        "fc2_w": lin(ks[15], num_classes, half),
    }


def reference_forward(x, raw, eps=1e-5):
    """Pure-JAX f32 reference of the PyTorch forward (inference-mode BN)."""
    def bn(h, g, b, m, v):
        return (h - m) / jnp.sqrt(v + eps) * g + b
    h = x @ raw["fc1_w"].T
    h = jax.nn.relu(bn(h, raw["bn1_g"], raw["bn1_b"], raw["bn1_m"], raw["bn1_v"]))
    h = h @ raw["fc1_1_w"].T
    h = jax.nn.relu(bn(h, raw["bn1_1_g"], raw["bn1_1_b"], raw["bn1_1_m"], raw["bn1_1_v"]))
    h = h @ raw["fc1_2_w"].T
    h = jax.nn.relu(bn(h, raw["bn1_2_g"], raw["bn1_2_b"], raw["bn1_2_m"], raw["bn1_2_v"]))
    return h @ raw["fc2_w"].T


if __name__ == "__main__":
    # TODO(synk): BatchNorm is applied in inference mode (running stats); PyTorch
    # training-mode batch statistics are not reproduced here.
    key = jax.random.PRNGKey(0)
    k_x, k_p = jax.random.split(key)

    B, feat_dim, num_classes = 16, 256, 580
    x = jax.random.normal(k_x, (B, feat_dim), jnp.float32)
    raw = make_raw_params(k_p, feat_dim=feat_dim, num_classes=num_classes)
    params = prepare_params(raw, num_classes)          # int8 weight-only quant (default)

    y = classifier_spk_forward(x, params)
    jax.block_until_ready(y)

    assert y.shape == (B, num_classes)
    assert bool(jnp.all(jnp.isfinite(y)))

    # Loose sanity check vs the f32 reference (int8 weights + bf16 activations are an
    # intentional bandwidth/precision trade; expected relative error ~1%).
    y_ref = reference_forward(x, raw)
    rel = float(jnp.linalg.norm(y - y_ref) / (jnp.linalg.norm(y_ref) + 1e-9))
    assert rel < 0.10, f"relative error too large: {rel}"

    print("KERNEL_OK")
</pallas_src>

<mosaic_0001>
module attributes {stable_mosaic.version = 11 : i64} {
  func.func @_classifier_kernel(%arg0: memref<16x256xf32, #tpu.memory_space<vmem>>, %arg1: memref<256x256xi8, #tpu.memory_space<vmem>>, %arg2: memref<256x128xi8, #tpu.memory_space<vmem>>, %arg3: memref<128x128xi8, #tpu.memory_space<vmem>>, %arg4: memref<128x640xi8, #tpu.memory_space<vmem>>, %arg5: memref<8x640xf32, #tpu.memory_space<vmem>>, %arg6: memref<16x640xf32, #tpu.memory_space<vmem>>) attributes {dimension_semantics = [], scalar_prefetch = 0 : i64, scratch_operands = 0 : i64, tpu.core_type = #tpu.core_type<tc>} {
    %c0 = arith.constant 0 : index
    %c0_0 = arith.constant 0 : index
    %0 = vector.load %arg0[%c0, %c0_0] : memref<16x256xf32, #tpu.memory_space<vmem>>, vector<16x256xf32>
    %1 = arith.truncf %0 : vector<16x256xf32> to vector<16x256xbf16>
    %c0_1 = arith.constant 0 : index
    %c0_2 = arith.constant 0 : index
    %2 = vector.load %arg5[%c0_1, %c0_2] : memref<8x640xf32, #tpu.memory_space<vmem>>, vector<1x256xf32>
    %c1 = arith.constant 1 : index
    %c0_3 = arith.constant 0 : index
    %3 = vector.load %arg5[%c1, %c0_3] : memref<8x640xf32, #tpu.memory_space<vmem>>, vector<1x128xf32>
    %c2 = arith.constant 2 : index
    %c0_4 = arith.constant 0 : index
    %4 = vector.load %arg5[%c2, %c0_4] : memref<8x640xf32, #tpu.memory_space<vmem>>, vector<1x128xf32>
    %c3 = arith.constant 3 : index
    %c0_5 = arith.constant 0 : index
    %5 = vector.load %arg5[%c3, %c0_5] : memref<8x640xf32, #tpu.memory_space<vmem>>, vector<1x256xf32>
    %c4 = arith.constant 4 : index
    %c0_6 = arith.constant 0 : index
    %6 = vector.load %arg5[%c4, %c0_6] : memref<8x640xf32, #tpu.memory_space<vmem>>, vector<1x128xf32>
    %c5 = arith.constant 5 : index
    %c0_7 = arith.constant 0 : index
    %7 = vector.load %arg5[%c5, %c0_7] : memref<8x640xf32, #tpu.memory_space<vmem>>, vector<1x128xf32>
    %c6 = arith.constant 6 : index
    %c0_8 = arith.constant 0 : index
    %8 = vector.load %arg5[%c6, %c0_8] : memref<8x640xf32, #tpu.memory_space<vmem>>, vector<1x640xf32>
    %c7 = arith.constant 7 : index
    %c0_9 = arith.constant 0 : index
    %9 = vector.load %arg5[%c7, %c0_9] : memref<8x640xf32, #tpu.memory_space<vmem>>, vector<1x640xf32>
    %c0_10 = arith.constant 0 : index
    %c0_11 = arith.constant 0 : index
    %10 = vector.load %arg1[%c0_10, %c0_11] : memref<256x256xi8, #tpu.memory_space<vmem>>, vector<256x256xi8>
    %11 = arith.sitofp %10 : vector<256x256xi8> to vector<256x256xbf16>
    %cst = arith.constant dense<0.000000e+00> : vector<16x256xf32>
    %12 = tpu.matmul %1, %11, %cst {dimension_numbers = #tpu.dot_dimension_numbers<[1], [0], [0], [1], [0, 0, 1, 1], [], []>} : vector<16x256xbf16>, vector<256x256xbf16>, vector<16x256xf32> -> vector<16x256xf32>
    %13 = vector.broadcast %5 : vector<1x256xf32> to vector<16x256xf32>
    %14 = arith.mulf %12, %13 : vector<16x256xf32>
    %15 = vector.broadcast %2 : vector<1x256xf32> to vector<16x256xf32>
    %16 = arith.addf %14, %15 : vector<16x256xf32>
    %cst_12 = arith.constant 0.000000e+00 : f32
    %17 = vector.broadcast %cst_12 : f32 to vector<16x256xf32>
    %18 = arith.maximumf %16, %17 : vector<16x256xf32>
    %19 = arith.truncf %18 : vector<16x256xf32> to vector<16x256xbf16>
    %c0_13 = arith.constant 0 : index
    %c0_14 = arith.constant 0 : index
    %20 = vector.load %arg2[%c0_13, %c0_14] : memref<256x128xi8, #tpu.memory_space<vmem>>, vector<256x128xi8>
    %21 = arith.sitofp %20 : vector<256x128xi8> to vector<256x128xbf16>
    %cst_15 = arith.constant dense<0.000000e+00> : vector<16x128xf32>
    %22 = tpu.matmul %19, %21, %cst_15 {dimension_numbers = #tpu.dot_dimension_numbers<[1], [0], [0], [1], [0, 0, 1, 1], [], []>} : vector<16x256xbf16>, vector<256x128xbf16>, vector<16x128xf32> -> vector<16x128xf32>
    %23 = vector.broadcast %6 : vector<1x128xf32> to vector<16x128xf32>
    %24 = arith.mulf %22, %23 : vector<16x128xf32>
    %25 = vector.broadcast %3 : vector<1x128xf32> to vector<16x128xf32>
    %26 = arith.addf %24, %25 : vector<16x128xf32>
    %cst_16 = arith.constant 0.000000e+00 : f32
    %27 = vector.broadcast %cst_16 : f32 to vector<16x128xf32>
    %28 = arith.maximumf %26, %27 : vector<16x128xf32>
    %29 = arith.truncf %28 : vector<16x128xf32> to vector<16x128xbf16>
    %c0_17 = arith.constant 0 : index
    %c0_18 = arith.constant 0 : index
    %30 = vector.load %arg3[%c0_17, %c0_18] : memref<128x128xi8, #tpu.memory_space<vmem>>, vector<128x128xi8>
    %31 = arith.sitofp %30 : vector<128x128xi8> to vector<128x128xbf16>
    %cst_19 = arith.constant dense<0.000000e+00> : vector<16x128xf32>
    %32 = tpu.matmul %29, %31, %cst_19 {dimension_numbers = #tpu.dot_dimension_numbers<[1], [0], [0], [1], [0, 0, 1, 1], [], []>} : vector<16x128xbf16>, vector<128x128xbf16>, vector<16x128xf32> -> vector<16x128xf32>
    %33 = vector.broadcast %7 : vector<1x128xf32> to vector<16x128xf32>
    %34 = arith.mulf %32, %33 : vector<16x128xf32>
    %35 = vector.broadcast %4 : vector<1x128xf32> to vector<16x128xf32>
    %36 = arith.addf %34, %35 : vector<16x128xf32>
    %cst_20 = arith.constant 0.000000e+00 : f32
    %37 = vector.broadcast %cst_20 : f32 to vector<16x128xf32>
    %38 = arith.maximumf %36, %37 : vector<16x128xf32>
    %39 = arith.truncf %38 : vector<16x128xf32> to vector<16x128xbf16>
    %c0_21 = arith.constant 0 : index
    %c0_22 = arith.constant 0 : index
    %40 = vector.load %arg4[%c0_21, %c0_22] : memref<128x640xi8, #tpu.memory_space<vmem>>, vector<128x640xi8>
    %41 = arith.sitofp %40 : vector<128x640xi8> to vector<128x640xbf16>
    %cst_23 = arith.constant dense<0.000000e+00> : vector<16x640xf32>
    %42 = tpu.matmul %39, %41, %cst_23 {dimension_numbers = #tpu.dot_dimension_numbers<[1], [0], [0], [1], [0, 0, 1, 1], [], []>} : vector<16x128xbf16>, vector<128x640xbf16>, vector<16x640xf32> -> vector<16x640xf32>
    %43 = vector.broadcast %8 : vector<1x640xf32> to vector<16x640xf32>
    %44 = arith.mulf %42, %43 : vector<16x640xf32>
    %45 = vector.broadcast %9 : vector<1x640xf32> to vector<16x640xf32>
    %46 = arith.addf %44, %45 : vector<16x640xf32>
    %c0_24 = arith.constant 0 : index
    %c0_25 = arith.constant 0 : index
    %47 = vector.load %arg6[%c0_24, %c0_25] : memref<16x640xf32, #tpu.memory_space<vmem>>, vector<16x640xf32>
    tpu.vector_store %arg6[%c0_24, %c0_25], %46 {strides = array<i32>} : memref<16x640xf32, #tpu.memory_space<vmem>>, vector<16x640xf32>,
    return
  }
}

</mosaic_0001>

<bundles_post_ra>
// kernel: _classifier_forward.1
= control target key start
LH: loop header
LB: loop body
LE: loop exit
PB: predicated region body
PF: predicated region fallthrough
CT: control target
= control target key end

     0   :  { %11 = vsyncpa [#allocation3], 0  ;;  %s1130_s0 = inlined_call_operand.hbm [shape: f32[16,256], index: 0, kind: input, shape index: {}]   ;;  %s1131_s1 = inlined_call_operand.hbm [shape: s8[256,256], index: 1, kind: input, shape index: {}]   ;;  %s1132_s2 = inlined_call_operand.hbm [shape: s8[256,128], index: 2, kind: input, shape index: {}]   ;;  %s1133_s3 = inlined_call_operand.hbm [shape: s8[128,128], index: 3, kind: input, shape index: {}]   ;;  %s1134_s4 = inlined_call_operand.hbm [shape: s8[128,640], index: 4, kind: input, shape index: {}]   ;;  %s1135_s5 = inlined_call_operand.hbm [shape: f32[8,640], index: 5, kind: input, shape index: {}]   ;;  %s1136_s6 = inlined_call_operand.hbm [shape: f32[16,640], index: 6, kind: output, shape index: {}]  }
   0x1   :  { %12 = vsyncpa [#allocation6], 0 }
   0x2   :  { %13 = vsyncpa [#allocation9], 0 }
   0x3   :  { %14 = vsyncpa [#allocation12], 0 }
   0x4   :  { %15 = vsyncpa [#allocation4], 0  ;;  %s934_s21 = smov [#allocation5]   ;;  %s770_s25 = scalar_lea.hbm %s1131_s1, 2048 }
   0x5   :  { %s33_s22 = sshll.u32 %s934_s21, 4  ;;  %p771_p0 = scmp.ne.s32.totalorder %s1131_s1, %s770_s25  ;;  %s34_s22 = int_to_ptr.vmem [resolvable:$true] %s33_s22 }
   0x6   :  { %p774_p1 = scmp.lt.u32.totalorder %s770_s25, %s1131_s1 }
   0x8   :  { %p776_p2 = pnand %p774_p1, %p771_p0 }
   0xa   :  { %779 = shalt.err (!%p776_p2)
}
   0xb   :  { %s780_s30 = scalar_lea.vmem %s34_s22, 2048  ;;  %p785_p4 = scmp.lt.s32.totalorder %s34_s22, %s34_s22 }
   0xc   :  { %p781_p3 = scmp.ne.s32.totalorder %s34_s22, %s780_s30  ;;  %p786_p5 = scmp.lt.s32.totalorder %s780_s30, %s780_s30 }
   0xe   :  { %p787_p6 = por %p786_p5, %p785_p4 }
  0x10   :  { %p788_p7 = pnand %p787_p6, %p781_p3 }
  0x12   :  { %791 = shalt.err (!%p788_p7)
}
  0x13   :  { %s935_s7 = smov 256   ;;  %s936_s8 = smov 16  }
  0x14   :  { %39 = dma.hbm_to_vmem [thread:$0]  %s1131_s1, 2048, %s34_s22, [#allocation6], %s935_s7, %s935_s7, %s936_s8  }
  0x15   :  { %s937_s11 = smov [#allocation8]   ;;  %s938_s13 = smov [#allocation2]  }
  0x16   :  { %s57_s12 = sshll.u32 %s937_s11, 4  ;;  %s21_s14 = sshll.u32 %s938_s13, 4  ;;  %s58_s12 = int_to_ptr.vmem [resolvable:$true] %s57_s12  ;;  %s22_s14 = int_to_ptr.vmem [resolvable:$true] %s21_s14 }
  0x17   :  { %s792_s17 = scalar_lea.hbm %s1133_s3, 512 }
  0x18   :  { %p793_p8 = scmp.ne.s32.totalorder %s1133_s3, %s792_s17  ;;  %p796_p9 = scmp.lt.u32.totalorder %s792_s17, %s1133_s3 }
  0x1a   :  { %p798_p10 = pnand %p796_p9, %p793_p8 }
  0x1c   :  { %801 = shalt.err (!%p798_p10)
}
  0x1d   :  { %s802_s1 = scalar_lea.vmem %s58_s12, 512  ;;  %p807_p12 = scmp.lt.s32.totalorder %s58_s12, %s58_s12 }
  0x1e   :  { %p803_p11 = scmp.ne.s32.totalorder %s58_s12, %s802_s1  ;;  %p808_p13 = scmp.lt.s32.totalorder %s802_s1, %s802_s1 }
  0x20   :  { %p809_p0 = por %p808_p13, %p807_p12 }
  0x22   :  { %p810_p1 = pnand %p809_p0, %p803_p11 }
  0x24   :  { %813 = shalt.err (!%p810_p1)
}
  0x25   :  { %s939_s22 = smov 128   ;;  %s940_s23 = smov 8  }
  0x26   :  { %63 = dma.hbm_to_vmem [thread:$0]  %s1133_s3, 512, %s58_s12, [#allocation9], %s939_s22, %s939_s22, %s940_s23  }
  0x27   :  { %s814_s28 = scalar_lea.hbm %s1130_s0, 512 }
  0x28   :  { %p815_p2 = scmp.ne.s32.totalorder %s1130_s0, %s814_s28  ;;  %p818_p3 = scmp.lt.u32.totalorder %s814_s28, %s1130_s0 }
  0x2a   :  { %p820_p4 = pnand %p818_p3, %p815_p2 }
  0x2c   :  { %823 = shalt.err (!%p820_p4)
}
  0x2d   :  { %s824_s11 = scalar_lea.vmem %s22_s14, 512  ;;  %p829_p6 = scmp.lt.s32.totalorder %s22_s14, %s22_s14 }
  0x2e   :  { %p825_p5 = scmp.ne.s32.totalorder %s22_s14, %s824_s11  ;;  %p830_p7 = scmp.lt.s32.totalorder %s824_s11, %s824_s11 }
  0x30   :  { %p831_p8 = por %p830_p7, %p829_p6 }
  0x32   :  { %p832_p9 = pnand %p831_p8, %p825_p5 }
  0x34   :  { %835 = shalt.err (!%p832_p9)
}
  0x35   :  { %27 = dma.hbm_to_vmem [thread:$0]  %s1130_s0, 512, %s22_s14, [#allocation3], %s935_s7, %s935_s7, %s936_s8  }
  0x36   :  { %s941_s13 = smov [#allocation7]   ;;  %s942_s16 = smov [#allocation10]  }
  0x37   :  { %s45_s15 = sshll.u32 %s941_s13, 4  ;;  %s69_s17 = sshll.u32 %s942_s16, 4  ;;  %s46_s15 = int_to_ptr.vmem [resolvable:$true] %s45_s15  ;;  %s70_s17 = int_to_ptr.vmem [resolvable:$true] %s69_s17 }
  0x38   :  { %s836_s20 = scalar_lea.hbm %s1132_s2, 1024 }
  0x39   :  { %p837_p10 = scmp.ne.s32.totalorder %s1132_s2, %s836_s20  ;;  %p840_p11 = scmp.lt.u32.totalorder %s836_s20, %s1132_s2 }
  0x3b   :  { %p842_p12 = pnand %p840_p11, %p837_p10 }
  0x3d   :  { %845 = shalt.err (!%p842_p12)
}
  0x3e   :  { %s846_s0 = scalar_lea.vmem %s46_s15, 1024  ;;  %p851_p0 = scmp.lt.s32.totalorder %s46_s15, %s46_s15 }
  0x3f   :  { %p847_p13 = scmp.ne.s32.totalorder %s46_s15, %s846_s0  ;;  %p852_p1 = scmp.lt.s32.totalorder %s846_s0, %s846_s0 }
  0x41   :  { %p853_p2 = por %p852_p1, %p851_p0 }
  0x43   :  { %p854_p3 = pnand %p853_p2, %p847_p13 }
  0x45   :  { %857 = shalt.err (!%p854_p3)
}
  0x46   :  { %51 = dma.hbm_to_vmem [thread:$0]  %s1132_s2, 1024, %s46_s15, [#allocation6], %s939_s22, %s939_s22, %s940_s23  }
  0x47   :  { %s858_s27 = scalar_lea.hbm %s1134_s4, 2560 }
  0x48   :  { %p859_p4 = scmp.ne.s32.totalorder %s1134_s4, %s858_s27  ;;  %p862_p5 = scmp.lt.u32.totalorder %s858_s27, %s1134_s4 }
  0x4a   :  { %p864_p6 = pnand %p862_p5, %p859_p4 }
  0x4c   :  { %867 = shalt.err (!%p864_p6)
}
  0x4d   :  { %s868_s10 = scalar_lea.vmem %s70_s17, 2560  ;;  %p873_p8 = scmp.lt.s32.totalorder %s70_s17, %s70_s17 }
  0x4e   :  { %p869_p7 = scmp.ne.s32.totalorder %s70_s17, %s868_s10  ;;  %p874_p9 = scmp.lt.s32.totalorder %s868_s10, %s868_s10 }
  0x50   :  { %p875_p10 = por %p874_p9, %p873_p8 }
  0x52   :  { %p876_p11 = pnand %p875_p10, %p869_p7 }
  0x54   :  { %879 = shalt.err (!%p876_p11)
}
  0x55   :  { %s943_s2 = smov 640   ;;  %s944_s22 = smov 40  }
  0x56   :  { %75 = dma.hbm_to_vmem [thread:$0]  %s1134_s4, 2560, %s70_s17, [#allocation9], %s943_s2, %s943_s2, %s944_s22  }
  0x57   :  { %s945_s3 = smov [#allocation11]   ;;  %s880_s16 = scalar_lea.hbm %s1135_s5, 640 }
  0x58   :  { %s82_s12 = sshll.u32 %s945_s3, 4  ;;  %p881_p12 = scmp.ne.s32.totalorder %s1135_s5, %s880_s16  ;;  %s83_s12 = int_to_ptr.vmem [resolvable:$true] %s82_s12 }
  0x59   :  { %p884_p13 = scmp.lt.u32.totalorder %s880_s16, %s1135_s5 }
  0x5b   :  { %p886_p0 = pnand %p884_p13, %p881_p12 }
  0x5d   :  { %889 = shalt.err (!%p886_p0)
}
  0x5e   :  { %s890_s1 = scalar_lea.vmem %s83_s12, 640  ;;  %p895_p2 = scmp.lt.s32.totalorder %s83_s12, %s83_s12 }
  0x5f   :  { %p891_p1 = scmp.ne.s32.totalorder %s83_s12, %s890_s1  ;;  %p896_p3 = scmp.lt.s32.totalorder %s890_s1, %s890_s1 }
  0x61   :  { %p897_p4 = por %p896_p3, %p895_p2 }
  0x63   :  { %p898_p5 = pnand %p897_p4, %p891_p1 }
  0x65   :  { %901 = shalt.err (!%p898_p5)
}
  0x66   :  { %85 = dma.hbm_to_vmem [thread:$0]  %s1135_s5, 640, %s83_s12, [#allocation12]  }
  0x67   :  { %924 = dma.done.wait [#allocation3], 512  }
  0x68   :  { %925 = vsyncadd [#allocation3], 4294966784 }
  0x69   :  { %926 = dma.done.wait [#allocation6], 3072  }
  0x6a   :  { %927 = vsyncadd [#allocation6], 4294964224 }
  0x6b   :  { %928 = dma.done.wait [#allocation9], 3072  }
  0x6c   :  { %929 = vsyncadd [#allocation9], 4294964224 }
  0x6d   :  { %930 = dma.done.wait [#allocation12], 640  }
  0x6e   :  { %931 = vsyncadd [#allocation12], 4294966656  ;;  %v127_v0 = vld [vmem:[#allocation5 + $0x8] sm:$0xff]  ;;  %v126_v1 = vld [vmem:[#allocation5] sm:$0xff]  ;;  %vm947_vm0 = vmmov 0   ;;  %s949_s5 = smov [#allocation13]  }
  0x6f   :  { %v143_v2 = vunpack.c.l.s8.bf16 %v127_v0  ;;  %v145_v3 = vunpack.c.h.s8.bf16 %v127_v0  ;;  %v142_v4 = vunpack.c.l.s8.bf16 %v126_v1  ;;  %v129_v5 = vld [vmem:[#allocation5 + $0x18] sm:$0xff]  ;;  %v144_v6 = vunpack.c.h.s8.bf16 %v126_v1  ;;  %v128_v8 = vld [vmem:[#allocation5 + $0x10] sm:$0xff]  ;;  %v106_v9 = vld [vmem:[#allocation2 + $0x8] sm:$0xff]  ;;  %s659_s24 = sshll.u32 %s949_s5, 4  ;;  %s660_s24 = int_to_ptr.vmem [resolvable:$true] %s659_s24 }
  0x70   :  { %v147_v7 = vunpack.c.l.s8.bf16 %v129_v5  ;;  %v108_v10 = vld [vmem:[#allocation2 + $0x18] sm:$0xff]  ;;  %v257_v11 = vld [vmem:[#allocation7 + $0x20] sm:$0xff]  ;;  %v146_v13 = vunpack.c.l.s8.bf16 %v128_v8  ;;  %v149_v14 = vunpack.c.h.s8.bf16 %v129_v5  ;;  %v131_v18 = vld [vmem:[#allocation5 + $0x28] sm:$0xff]  ;;  %v148_v21 = vunpack.c.h.s8.bf16 %v128_v8  ;;  %s902_s25 = scalar_lea.vmem %s660_s24, 1280  ;;  %p907_p7 = scmp.lt.s32.totalorder %s660_s24, %s660_s24 }
  0x71   :  { %174 = vmatprep.subr.bf16.mxu0 %v143_v2  ;;  %v253_v12 = vld [vmem:[#allocation7] sm:$0xff]  ;;  %v110_v15 = vpack.c.bf16 %v108_v10, %v106_v9  ;;  %v269_v16 = vunpack.c.l.s8.bf16 %v257_v11  ;;  %v270_v17 = vunpack.c.h.s8.bf16 %v257_v11  ;;  %v258_v20 = vld [vmem:[#allocation7 + $0x28] sm:$0xff]  ;;  %v151_v23 = vunpack.c.l.s8.bf16 %v131_v18  ;;  %v133_v31 = vld [vmem:[#allocation5 + $0x38] sm:$0xff]  ;;  %p903_p6 = scmp.ne.s32.totalorder %s660_s24, %s902_s25  ;;  %p908_p8 = scmp.lt.s32.totalorder %s902_s25, %s902_s25 }
  0x72   :  { %175 = vmatpush1.bf16.msra.mxu0 %v142_v4  ;;  %v261_v19 = vunpack.c.l.s8.bf16 %v253_v12  ;;  %v262_v22 = vunpack.c.h.s8.bf16 %v253_v12  ;;  %v130_v24 = vld [vmem:[#allocation5 + $0x20] sm:$0xff]  ;;  %v271_v25 = vunpack.c.l.s8.bf16 %v258_v20  ;;  %v254_v26 = vld [vmem:[#allocation7 + $0x8] sm:$0xff]  ;;  %v153_v29 = vunpack.c.h.s8.bf16 %v131_v18  ;;  %v1072_v32 = vld [vmem:[#allocation7 + $0x30] sm:$0xff] }
  0x73   :  { %176 = vmatprep.subr.bf16.mxu0 %v145_v3  ;;  %206 = vmatprep.mubr.bf16.mxu0 %v110_v15  ;;  %v150_v27 = vunpack.c.l.s8.bf16 %v130_v24  ;;  %v263_v28 = vunpack.c.l.s8.bf16 %v254_v26  ;;  %v272_v30 = vunpack.c.h.s8.bf16 %v258_v20  ;;  %v152_v33 = vunpack.c.h.s8.bf16 %v130_v24  ;;  %v132_v36 = vld [vmem:[#allocation5 + $0x30] sm:$0xff]  ;;  %v135_v42 = vld [vmem:[#allocation5 + $0x48] sm:$0xff]  ;;  %v134_v45 = vld [vmem:[#allocation5 + $0x40] sm:$0xff]  ;;  %p909_p9 = por %p908_p8, %p907_p7 }
  0x74   :  { %674 = vmatprep.subr.bf16.mxu1 %v269_v16  ;;  %v264_v34 = vunpack.c.h.s8.bf16 %v254_v26  ;;  %v155_v35 = vunpack.c.l.s8.bf16 %v133_v31  ;;  %v273_v37 = vunpack.c.l.s8.bf16 %v1072_v32  ;;  %v255_v38 = vld [vmem:[#allocation7 + $0x10] sm:$0xff]  ;;  %v154_v39 = vunpack.c.l.s8.bf16 %v132_v36  ;;  %v137_v48 = vld [vmem:[#allocation5 + $0x58] sm:$0xff]  ;;  %v139_v54 = vld [vmem:[#allocation5 + $0x68] sm:$0xff] }
  0x75   :  { %675 = vmatpush3.bf16.msra.mxu1 %v261_v19  ;;  %v265_v40 = vunpack.c.l.s8.bf16 %v255_v38  ;;  %v157_v41 = vunpack.c.h.s8.bf16 %v133_v31  ;;  %v156_v43 = vunpack.c.h.s8.bf16 %v132_v36  ;;  %v159_v44 = vunpack.c.l.s8.bf16 %v135_v42  ;;  %v136_v51 = vld [vmem:[#allocation5 + $0x50] sm:$0xff]  ;;  %v138_v57 = vld [vmem:[#allocation5 + $0x60] sm:$0xff]  ;;  %v141_v60 = vld [vmem:[#allocation5 + $0x78] sm:$0xff]  ;;  %p910_p10 = pnand %p909_p9, %p903_p6 }
  0x76   :  { %177 = vmatpush1.bf16.msra.mxu0 %v144_v6  ;;  %676 = vmatprep.subr.bf16.mxu1 %v270_v17  ;;  %v158_v46 = vunpack.c.l.s8.bf16 %v134_v45  ;;  %v161_v47 = vunpack.c.h.s8.bf16 %v135_v42  ;;  %v160_v49 = vunpack.c.h.s8.bf16 %v134_v45  ;;  %v163_v50 = vunpack.c.l.s8.bf16 %v137_v48  ;;  %v140_v63 = vld [vmem:[#allocation5 + $0x70] sm:$0xff]  ;;  %v105_v3 = vld [vmem:[#allocation2] sm:$0xff]  ;;  %v260_v8 = vld [vmem:[#allocation7 + $0x38] sm:$0xff] }
  0x77   :  { %178 = vmatprep.subr.bf16.mxu0 %v147_v7  ;;  %v162_v52 = vunpack.c.l.s8.bf16 %v136_v51  ;;  %v165_v53 = vunpack.c.h.s8.bf16 %v137_v48  ;;  %v164_v55 = vunpack.c.h.s8.bf16 %v136_v51  ;;  %v167_v56 = vunpack.c.l.s8.bf16 %v139_v54  ;;  %v107_v4 = vld [vmem:[#allocation2 + $0x10] sm:$0xff]  ;;  %v256_v10 = vld [vmem:[#allocation7 + $0x18] sm:$0xff]  ;;  %v115_v18 = vld [vmem:[#allocation11 + $0x3] ss:$8 sm:$0x3] }
  0x78   :  { %v166_v58 = vunpack.c.l.s8.bf16 %v138_v57  ;;  %v169_v59 = vunpack.c.h.s8.bf16 %v139_v54  ;;  %v168_v61 = vunpack.c.h.s8.bf16 %v138_v57  ;;  %v171_v62 = vunpack.c.l.s8.bf16 %v141_v60  ;;  %v111_v20 = vld [vmem:[#allocation11] ss:$8 sm:$0x3]  ;;  %v388_v57 = vld [vmem:[#allocation10 + $0x18] sm:$0xff] }
  0x79   :  { %677 = vmatpush3.bf16.msra.mxu1 %v262_v22  ;;  %v170_v0 = vunpack.c.l.s8.bf16 %v140_v63  ;;  %v173_v1 = vunpack.c.h.s8.bf16 %v141_v60  ;;  %v172_v2 = vunpack.c.h.s8.bf16 %v140_v63  ;;  %v109_v5 = vpack.c.bf16 %v107_v4, %v105_v3  ;;  %v391_v63 = vld [vmem:[#allocation10 + $0x30] sm:$0xff] }
  0x7a   :  { %179 = vmatpush1.bf16.msra.mxu0 %v146_v13  ;;  %678 = vmatprep.subr.bf16.mxu1 %v271_v25  ;;  %v274_v6 = vunpack.c.h.s8.bf16 %v1072_v32  ;;  %v266_v7 = vunpack.c.h.s8.bf16 %v255_v38  ;;  %v275_v9 = vunpack.c.l.s8.bf16 %v260_v8  ;;  %v267_v11 = vunpack.c.l.s8.bf16 %v256_v10 }
  0x7b   :  { %180 = vmatprep.subr.bf16.mxu0 %v149_v14  ;;  %v276_v12 = vunpack.c.h.s8.bf16 %v260_v8  ;;  %v268_v13 = vunpack.c.h.s8.bf16 %v256_v10  ;;  %v946_v14 = vmov 0.0   ;;  %v218_v15 = vlaneseq }
  0x7c   :  { %v408_v60 = vunpack.c.l.s8.bf16 %v388_v57  ;;  %v421_v3 = vunpack.c.h.s8.bf16 %v391_v63 }
  0x7d   :  { %679 = vmatpush3.bf16.msra.mxu1 %v263_v28  ;;  %v1077_v16 = vshrl.u32 %v218_v15, 7 }
  0x7e   :  { %181 = vmatpush1.bf16.msra.mxu0 %v148_v21  ;;  %680 = vmatprep.subr.bf16.mxu1 %v272_v30 }
  0x7f   :  { %182 = vmatprep.subr.bf16.mxu0 %v151_v23  ;;  %v1080_v17 = vsub.s32 0, %v1077_v16  ;;  %v1083_v19 = vsub.s32 1, %v1077_v16 }
  0x81   :  { %681 = vmatpush3.bf16.msra.mxu1 %v264_v34  ;;  %v221_v21 = vrot.slane %v115_v18, %v1080_v17  ;;  %v225_v22 = vrot.slane %v115_v18, %v1083_v19  ;;  %v236_v23 = vrot.slane %v111_v20, %v1080_v17  ;;  %v240_v25 = vrot.slane %v111_v20, %v1083_v19  ;;  %v112_v20 = vld [vmem:[#allocation11 + $0x1] ss:$0 sm:$0xff] }
  0x82   :  { %183 = vmatpush1.bf16.msra.mxu0 %v150_v27  ;;  %682 = vmatprep.subr.bf16.mxu1 %v273_v37 }
  0x83   :  { %184 = vmatprep.subr.bf16.mxu0 %v153_v29 }
  0x85   :  { %683 = vmatpush3.bf16.msra.mxu1 %v265_v40 }
  0x86   :  { %185 = vmatpush1.bf16.msra.mxu0 %v152_v33  ;;  %684 = vmatprep.subr.bf16.mxu1 %v274_v6  ;;  %v395_v6 = vld [vmem:[#allocation10 + $0x50] sm:$0xff] }
  0x87   :  { %186 = vmatprep.subr.bf16.mxu0 %v155_v35  ;;  %v425_v8 = vunpack.c.l.s8.bf16 %v395_v6  ;;  %v430_v10 = vunpack.c.h.s8.bf16 %v395_v6 }
  0x89   :  { %685 = vmatpush3.bf16.msra.mxu1 %v266_v7 }
  0x8a   :  { %187 = vmatpush1.bf16.msra.mxu0 %v154_v39  ;;  %686 = vmatprep.subr.bf16.mxu1 %v275_v9  ;;  %v325_v39 = vld [vmem:[#allocation8] sm:$0xff] }
  0x8b   :  { %188 = vmatprep.subr.bf16.mxu0 %v157_v41  ;;  %v330_v45 = vunpack.c.h.s8.bf16 %v325_v39 }
  0x8d   :  { %687 = vmatpush3.bf16.msra.mxu1 %v267_v11 }
  0x8e   :  { %189 = vmatpush1.bf16.msra.mxu0 %v156_v43  ;;  %688 = vmatprep.subr.bf16.mxu1 %v276_v12  ;;  %v116_v12 = vld [vmem:[#allocation11 + $0x4] ss:$0 sm:$0xff] }
  0x8f   :  { %190 = vmatprep.subr.bf16.mxu0 %v159_v44  ;;  %v329_v44 = vunpack.c.l.s8.bf16 %v325_v39  ;;  %v398_v39 = vld [vmem:[#allocation10 + $0x68] sm:$0xff] }
  0x91   :  { %689 = vmatpush3.bf16.msra.mxu1 %v268_v13 }
  0x92   :  { %191 = vmatpush1.bf16.msra.mxu0 %v158_v46  ;;  %714 = vmatprep.subr.bf16.mxu1 %v946_v14  ;;  %v326_v46 = vld [vmem:[#allocation8 + $0x8] sm:$0xff] }
  0x93   :  { %192 = vmatprep.subr.bf16.mxu0 %v161_v47  ;;  %v331_v47 = vunpack.c.l.s8.bf16 %v326_v46  ;;  %v332_v48 = vunpack.c.h.s8.bf16 %v326_v46  ;;  %v401_v46 = vld [vmem:[#allocation10 + $0x80] sm:$0xff] }
  0x96   :  { %193 = vmatpush1.bf16.msra.mxu0 %v160_v49  ;;  %v327_v49 = vld [vmem:[#allocation8 + $0x10] sm:$0xff] }
  0x97   :  { %194 = vmatprep.subr.bf16.mxu0 %v163_v50  ;;  %v333_v50 = vunpack.c.l.s8.bf16 %v327_v49  ;;  %v334_v51 = vunpack.c.h.s8.bf16 %v327_v49  ;;  %v403_v49 = vld [vmem:[#allocation10 + $0x90] sm:$0xff] }
  0x9a   :  { %195 = vmatpush1.bf16.msra.mxu0 %v162_v52  ;;  %v328_v52 = vld [vmem:[#allocation8 + $0x18] sm:$0xff] }
  0x9b   :  { %196 = vmatprep.subr.bf16.mxu0 %v165_v53  ;;  %v335_v53 = vunpack.c.l.s8.bf16 %v328_v52  ;;  %v336_v54 = vunpack.c.h.s8.bf16 %v328_v52  ;;  %v402_v52 = vld [vmem:[#allocation10 + $0x88] sm:$0xff] }
  0x9e   :  { %197 = vmatpush1.bf16.msra.mxu0 %v164_v55  ;;  %v386_v55 = vld [vmem:[#allocation10 + $0x8] sm:$0xff] }
  0x9f   :  { %198 = vmatprep.subr.bf16.mxu0 %v167_v56  ;;  %v385_v56 = vld [vmem:[#allocation10] sm:$0xff] }
  0xa2   :  { %199 = vmatpush1.bf16.msra.mxu0 %v166_v58  ;;  %v406_v58 = vunpack.c.l.s8.bf16 %v386_v55 }
  0xa3   :  { %200 = vmatprep.subr.bf16.mxu0 %v169_v59  ;;  %v405_v59 = vunpack.c.l.s8.bf16 %v385_v56 }
  0xa6   :  { %201 = vmatpush1.bf16.msra.mxu0 %v168_v61  ;;  %v411_v61 = vunpack.c.h.s8.bf16 %v386_v55 }
  0xa7   :  { %202 = vmatprep.subr.bf16.mxu0 %v171_v62  ;;  %v410_v62 = vunpack.c.h.s8.bf16 %v385_v56  ;;  %v443_v56 = vunpack.c.h.s8.bf16 %v403_v49 }
  0xaa   :  { %203 = vmatpush1.bf16.msra.mxu0 %v170_v0  ;;  %v390_v0 = vld [vmem:[#allocation10 + $0x28] sm:$0xff] }
  0xab   :  { %204 = vmatprep.subr.bf16.mxu0 %v173_v1  ;;  %v416_v1 = vunpack.c.l.s8.bf16 %v391_v63  ;;  %v420_v4 = vunpack.c.h.s8.bf16 %v390_v0 }
  0xae   :  { %205 = vmatpush1.bf16.msra.mxu0 %v172_v2  ;;  %v415_v2 = vunpack.c.l.s8.bf16 %v390_v0 }
  0xaf   :  { %445 = vmatprep.subr.bf16.mxu0 %v406_v58  ;;  %v948_v58 = vmov 0  }
  0xb1   :  { %207 = vmatmul.mubr.bf16.vlgmr.msra.gmra.mrb[0].mxu0 %v109_v5  ;;  %v396_v5 = vld [vmem:[#allocation10 + $0x58] sm:$0xff] }
  0xb2   :  { %446 = vmatpush1.bf16.msra.mxu0 %v405_v59  ;;  %v426_v7 = vunpack.c.l.s8.bf16 %v396_v5  ;;  %v431_v9 = vunpack.c.h.s8.bf16 %v396_v5  ;;  %477 = vmatprep.mubr.bf16.mxu0 %v948_v58  ;;  %v117_v59 = vld [vmem:[#allocation11 + $0x5] ss:$0 sm:$0xff] }
  0xb3   :  { %447 = vmatprep.subr.bf16.mxu0 %v411_v61  ;;  %v389_v5 = vld [vmem:[#allocation10 + $0x20] sm:$0xff] }
  0xb6   :  { %448 = vmatpush1.bf16.msra.mxu0 %v410_v62 }
  0xb7   :  { %449 = vmatprep.subr.bf16.mxu0 %v416_v1 }
  0xba   :  { %450 = vmatpush1.bf16.msra.mxu0 %v415_v2 }
  0xbb   :  { %451 = vmatprep.subr.bf16.mxu0 %v421_v3 }
  0xbe   :  { %452 = vmatpush1.bf16.msra.mxu0 %v420_v4 }
  0xbf   :  { %453 = vmatprep.subr.bf16.mxu0 %v426_v7 }
  0xc2   :  { %454 = vmatpush1.bf16.msra.mxu0 %v425_v8  ;;  %v409_v8 = vunpack.c.l.s8.bf16 %v389_v5 }
  0xc3   :  { %455 = vmatprep.subr.bf16.mxu0 %v431_v9 }
  0xc6   :  { %456 = vmatpush1.bf16.msra.mxu0 %v430_v10  ;;  %v414_v10 = vunpack.c.h.s8.bf16 %v389_v5 }
 0x184   :  { %v208_v24 = vpop.f32.mrb[0].mxu0 }
 0x185   :  { %v228_v26 = vmul.f32 %v221_v21, %v208_v24  ;;  %v210_v27 = vpop.f32.mrb[1].mxu0 }
 0x186   :  { %v229_v28 = vmul.f32 %v225_v22, %v210_v27  ;;  %v212_v29 = vpop.f32.mrb[2].mxu0  ;;  %v387_v27 = vld [vmem:[#allocation10 + $0x10] sm:$0xff] }
 0x187   :  { %v243_v30 = vadd.f32 %v236_v23, %v228_v26  ;;  %v230_v31 = vmul.f32 %v221_v21, %v212_v29  ;;  %v214_v32 = vpop.f32.mrb[3].mxu0 }
 0x188   :  { %v231_v33 = vmul.f32 %v225_v22, %v214_v32  ;;  %v244_v34 = vadd.f32 %v240_v25, %v229_v28  ;;  %v413_v32 = vunpack.c.h.s8.bf16 %v388_v57  ;;  %v442_v57 = vunpack.c.h.s8.bf16 %v402_v52 }
 0x189   :  { %v245_v35 = vadd.f32 %v236_v23, %v230_v31  ;;  %v247_v37 = vmax.f32 %v243_v30, 0.0  ;;  %v407_v30 = vunpack.c.l.s8.bf16 %v387_v27 }
 0x18a   :  { %v246_v36 = vadd.f32 %v240_v25, %v231_v33  ;;  %v248_v40 = vmax.f32 %v244_v34, 0.0  ;;  %v393_v33 = vld [vmem:[#allocation10 + $0x40] sm:$0xff]  ;;  %v412_v34 = vunpack.c.h.s8.bf16 %v387_v27 }
 0x18b   :  { %v249_v38 = vmax.f32 %v245_v35, 0.0  ;;  %v418_v35 = vunpack.c.l.s8.bf16 %v393_v33  ;;  %v124_v27 = vld [vmem:[#allocation11 + $0x7] ss:$8 sm:$0x10] }
 0x18c   :  { %v250_v41 = vmax.f32 %v246_v36, 0.0  ;;  %v392_v36 = vld [vmem:[#allocation10 + $0x38] sm:$0xff] }
 0x18d   :  { %v251_v42 = vpack.c.bf16 %v249_v38, %v247_v37  ;;  %v417_v37 = vunpack.c.l.s8.bf16 %v392_v36  ;;  %v423_v38 = vunpack.c.h.s8.bf16 %v393_v33 }
 0x18e   :  { %v252_v43 = vpack.c.bf16 %v250_v41, %v248_v40  ;;  %v422_v40 = vunpack.c.h.s8.bf16 %v392_v36  ;;  %v428_v41 = vunpack.c.l.s8.bf16 %v398_v39 }
 0x190   :  { %309 = vmatprep.mubr.bf16.mxu1 %v252_v43 }
 0x191   :  { %310 = vmatmul.mubr.bf16.vlgmr.msra.gmra.mrb[0].mxu1 %v251_v42  ;;  %v397_v42 = vld [vmem:[#allocation10 + $0x60] sm:$0xff] }
 0x192   :  { %715 = vmatpush3.bf16.msra.mxu1 %v329_v44  ;;  %730 = vmatprep.mubr.msk.bf16.mxu1 %vm947_vm0, %v946_v14  ;;  %v427_v43 = vunpack.c.l.s8.bf16 %v397_v42  ;;  %v433_v44 = vunpack.c.h.s8.bf16 %v398_v39 }
 0x193   :  { %716 = vmatprep.subr.bf16.mxu1 %v946_v14 }
 0x196   :  { %717 = vmatpush3.bf16.msra.mxu1 %v330_v45  ;;  %v432_v45 = vunpack.c.h.s8.bf16 %v397_v42 }
 0x197   :  { %718 = vmatprep.subr.bf16.mxu1 %v946_v14 }
 0x19a   :  { %719 = vmatpush3.bf16.msra.mxu1 %v331_v47  ;;  %v436_v47 = vunpack.c.l.s8.bf16 %v401_v46 }
 0x19b   :  { %720 = vmatprep.subr.bf16.mxu1 %v946_v14 }
 0x19c   :  { %457 = vmatprep.subr.bf16.mxu0 %v436_v47 }
 0x19e   :  { %721 = vmatpush3.bf16.msra.mxu1 %v332_v48  ;;  %v400_v48 = vld [vmem:[#allocation10 + $0x78] sm:$0xff] }
 0x19f   :  { %722 = vmatprep.subr.bf16.mxu1 %v946_v14  ;;  %v440_v55 = vunpack.c.h.s8.bf16 %v400_v48 }
 0x1a2   :  { %723 = vmatpush3.bf16.msra.mxu1 %v333_v50  ;;  %v435_v50 = vunpack.c.l.s8.bf16 %v400_v48 }
 0x1a3   :  { %724 = vmatprep.subr.bf16.mxu1 %v946_v14 }
 0x1a4   :  { %458 = vmatpush1.bf16.msra.mxu0 %v435_v50 }
 0x1a6   :  { %725 = vmatpush3.bf16.msra.mxu1 %v334_v51  ;;  %v438_v51 = vunpack.c.l.s8.bf16 %v403_v49 }
 0x1a7   :  { %726 = vmatprep.subr.bf16.mxu1 %v946_v14 }
 0x1aa   :  { %727 = vmatpush3.bf16.msra.mxu1 %v335_v53  ;;  %v437_v53 = vunpack.c.l.s8.bf16 %v402_v52 }
 0x1ab   :  { %728 = vmatprep.subr.bf16.mxu1 %v946_v14 }
 0x1ae   :  { %729 = vmatpush3.bf16.msra.mxu1 %v336_v54  ;;  %v441_v54 = vunpack.c.h.s8.bf16 %v401_v46 }
 0x1af   :  { %488 = vmatprep.subr.bf16.mxu1 %v408_v60  ;;  %v113_v60 = vld [vmem:[#allocation11 + $0x2] ss:$0 sm:$0xff] }
 0x1b0   :  { %459 = vmatprep.subr.bf16.mxu0 %v441_v54 }
 0x1b1   :  { %460 = vmatpush1.bf16.msra.mxu0 %v440_v55 }
 0x1b2   :  { %734 = vmatprep.subr.bf16.mxu0 %v946_v14 }
 0x264   :  { %v690_v11 = vpop.f32.mrb[0].mxu1 }
 0x265   :  { %v691_v13 = vpop.f32.mrb[1].mxu1 }
 0x266   :  { %v692_v15 = vadd.f32 %v691_v13, %v690_v11  ;;  %v693_v18 = vpop.f32.mrb[2].mxu1  ;;  %v394_v11 = vld [vmem:[#allocation10 + $0x48] sm:$0xff] }
 0x267   :  { %v694_v21 = vpop.f32.mrb[3].mxu1  ;;  %v424_v13 = vunpack.c.h.s8.bf16 %v394_v11 }
 0x268   :  { %v318_v22 = vmul.f32 %v692_v15, %v116_v12  ;;  %v695_v23 = vadd.f32 %v694_v21, %v693_v18  ;;  %v399_v15 = vld [vmem:[#allocation10 + $0x70] sm:$0xff]  ;;  %v404_v21 = vld [vmem:[#allocation10 + $0x98] sm:$0xff] }
 0x269   :  { %v429_v18 = vunpack.c.l.s8.bf16 %v399_v15 }
 0x26a   :  { %v320_v24 = vadd.f32 %v318_v22, %v112_v20  ;;  %v319_v25 = vmul.f32 %v695_v23, %v116_v12  ;;  %v419_v12 = vunpack.c.l.s8.bf16 %v394_v11  ;;  %v439_v22 = vunpack.c.l.s8.bf16 %v404_v21 }
 0x26b   :  { %v444_v23 = vunpack.c.h.s8.bf16 %v404_v21 }
 0x26c   :  { %v321_v26 = vadd.f32 %v319_v25, %v112_v20  ;;  %v322_v28 = vmax.f32 %v320_v24, 0.0  ;;  %v434_v20 = vunpack.c.h.s8.bf16 %v399_v15  ;;  %v119_v24 = vld [vmem:[#allocation11 + $0x6] ss:$8 sm:$0xf] }
 0x26d   :  { %v120_v25 = vld [vmem:[#allocation11 + $0x6] ss:$8 sm:$0x10] }
 0x26e   :  { %v323_v29 = vmax.f32 %v321_v26, 0.0  ;;  %v123_v26 = vld [vmem:[#allocation11 + $0x7] ss:$8 sm:$0xf] }
 0x270   :  { %v324_v31 = vpack.c.bf16 %v323_v29, %v322_v28  ;;  %v121_v28 = vor.u32 %v120_v25, %v119_v24  ;;  %v583_v29 = vsub.s32 2, %v1077_v16 }
 0x272   :  { %731 = vmatmul.mubr.bf16.vlgmr.msra.gmra.mrb[4].mxu1 %v324_v31  ;;  %v125_v31 = vor.u32 %v124_v27, %v123_v26  ;;  %v584_v33 = vrot.slane %v121_v28, %v583_v29 }
 0x273   :  { %489 = vmatpush1.bf16.msra.mxu1 %v407_v30  ;;  %520 = vmatprep.mubr.bf16.mxu1 %v948_v58  ;;  %v587_v30 = vsub.s32 3, %v1077_v16 }
 0x274   :  { %490 = vmatprep.subr.bf16.mxu1 %v413_v32  ;;  %v576_v32 = vrot.slane %v121_v28, %v1080_v17  ;;  %v620_v36 = vrot.slane %v125_v31, %v583_v29  ;;  %v616_v39 = vrot.slane %v125_v31, %v1083_v19 }
 0x277   :  { %491 = vmatpush1.bf16.msra.mxu1 %v412_v34  ;;  %v580_v34 = vrot.slane %v121_v28, %v1083_v19 }
 0x278   :  { %492 = vmatprep.subr.bf16.mxu1 %v418_v35  ;;  %v588_v35 = vrot.slane %v121_v28, %v587_v30 }
 0x27b   :  { %493 = vmatpush1.bf16.msra.mxu1 %v417_v37 }
 0x27c   :  { %494 = vmatprep.subr.bf16.mxu1 %v423_v38 }
 0x27f   :  { %495 = vmatpush1.bf16.msra.mxu1 %v422_v40  ;;  %v624_v40 = vrot.slane %v125_v31, %v587_v30 }
 0x280   :  { %496 = vmatprep.subr.bf16.mxu1 %v428_v41 }
 0x283   :  { %497 = vmatpush1.bf16.msra.mxu1 %v427_v43 }
 0x284   :  { %498 = vmatprep.subr.bf16.mxu1 %v433_v44 }
 0x287   :  { %499 = vmatpush1.bf16.msra.mxu1 %v432_v45 }
 0x288   :  { %500 = vmatprep.subr.bf16.mxu1 %v438_v51 }
 0x28b   :  { %501 = vmatpush1.bf16.msra.mxu1 %v437_v53 }
 0x28c   :  { %502 = vmatprep.subr.bf16.mxu1 %v443_v56 }
 0x28f   :  { %503 = vmatpush1.bf16.msra.mxu1 %v442_v57 }
 0x345   :  { %v371_v61 = vpop.f32.mrb[4].mxu1 }
 0x346   :  { %v378_v62 = vmul.f32 %v371_v61, %v117_v59  ;;  %v732_v63 = vpop.f32.mrb[5].mxu1  ;;  %v591_v61 = vsub.s32 4, %v1077_v16 }
 0x347   :  { %v374_v0 = vpop.f32.mrb[6].mxu1 }
 0x348   :  { %v380_v1 = vadd.f32 %v378_v62, %v113_v60  ;;  %v379_v2 = vmul.f32 %v374_v0, %v117_v59  ;;  %v733_v3 = vpop.f32.mrb[7].mxu1  ;;  %v592_v62 = vrot.slane %v121_v28, %v591_v61  ;;  %v628_v63 = vrot.slane %v125_v31, %v591_v61 }
 0x34a   :  { %v381_v4 = vadd.f32 %v379_v2, %v113_v60  ;;  %v382_v6 = vmax.f32 %v380_v1, 0.0 }
 0x34c   :  { %v383_v7 = vmax.f32 %v381_v4, 0.0 }
 0x34e   :  { %v384_v9 = vpack.c.bf16 %v383_v7, %v382_v6 }
 0x350   :  { %478 = vmatmul.mubr.bf16.vlgmr.msra.gmra.mrb[4].mxu0 %v384_v9  ;;  %521 = vmatmul.mubr.bf16.vlgmr.msra.gmra.mrb[8].mxu1 %v384_v9 }
 0x351   :  { %735 = vmatpush3.bf16.msra.mxu0 %v409_v8  ;;  %750 = vmatprep.mubr.msk.bf16.mxu0 %vm947_vm0, %v946_v14 }
 0x352   :  { %736 = vmatprep.subr.bf16.mxu0 %v946_v14 }
 0x355   :  { %737 = vmatpush3.bf16.msra.mxu0 %v414_v10 }
 0x356   :  { %738 = vmatprep.subr.bf16.mxu0 %v946_v14 }
 0x359   :  { %739 = vmatpush3.bf16.msra.mxu0 %v419_v12 }
 0x35a   :  { %740 = vmatprep.subr.bf16.mxu0 %v946_v14 }
 0x35d   :  { %741 = vmatpush3.bf16.msra.mxu0 %v424_v13 }
 0x35e   :  { %742 = vmatprep.subr.bf16.mxu0 %v946_v14 }
 0x361   :  { %743 = vmatpush3.bf16.msra.mxu0 %v429_v18 }
 0x362   :  { %744 = vmatprep.subr.bf16.mxu0 %v946_v14 }
 0x365   :  { %745 = vmatpush3.bf16.msra.mxu0 %v434_v20 }
 0x366   :  { %746 = vmatprep.subr.bf16.mxu0 %v946_v14 }
 0x369   :  { %747 = vmatpush3.bf16.msra.mxu0 %v439_v22 }
 0x36a   :  { %748 = vmatprep.subr.bf16.mxu0 %v946_v14  ;;  %v612_v14 = vrot.slane %v125_v31, %v1080_v17 }
 0x36d   :  { %749 = vmatpush3.bf16.msra.mxu0 %v444_v23 }
 0x370   :  { %751 = vmatmul.mubr.bf16.vlgmr.msra.gmra.mrb[8].mxu0 %v384_v9 }
 0x423   :  { %v479_v37 = vpop.f32.mrb[4].mxu0  ;;  %v522_v38 = vpop.f32.mrb[8].mxu1 }
 0x424   :  { %v598_v41 = vmul.f32 %v576_v32, %v479_v37  ;;  %v600_v42 = vmul.f32 %v584_v33, %v522_v38  ;;  %v481_v43 = vpop.f32.mrb[5].mxu0  ;;  %v524_v44 = vpop.f32.mrb[9].mxu1 }
 0x425   :  { %v599_v45 = vmul.f32 %v580_v34, %v481_v43  ;;  %v601_v46 = vmul.f32 %v588_v35, %v524_v44  ;;  %v483_v47 = vpop.f32.mrb[6].mxu0  ;;  %v526_v48 = vpop.f32.mrb[10].mxu1 }
 0x426   :  { %v634_v49 = vadd.f32 %v612_v14, %v598_v41  ;;  %v636_v50 = vadd.f32 %v620_v36, %v600_v42  ;;  %v603_v51 = vmul.f32 %v576_v32, %v483_v47  ;;  %v605_v52 = vmul.f32 %v584_v33, %v526_v48  ;;  %v485_v53 = vpop.f32.mrb[7].mxu0  ;;  %v528_v17 = vpop.f32.mrb[11].mxu1 }
 0x427   :  { %v635_v54 = vadd.f32 %v616_v39, %v599_v45  ;;  %v637_v55 = vadd.f32 %v624_v40, %v601_v46  ;;  %v604_v56 = vmul.f32 %v580_v34, %v485_v53  ;;  %v606_v57 = vmul.f32 %v588_v35, %v528_v17 }
 0x428   :  { %644 = vst [vmem:[#allocation13] sm:$0xff] %v634_v49  ;;  %646 = vst [vmem:[#allocation13 + $0x10] sm:$0xff] %v636_v50  ;;  %v639_v19 = vadd.f32 %v612_v14, %v603_v51  ;;  %v641_v58 = vadd.f32 %v620_v36, %v605_v52 }
 0x429   :  { %645 = vst [vmem:[#allocation13 + $0x8] sm:$0xff] %v635_v54  ;;  %647 = vst [vmem:[#allocation13 + $0x18] sm:$0xff] %v637_v55  ;;  %v640_v59 = vadd.f32 %v616_v39, %v604_v56  ;;  %v642_v60 = vadd.f32 %v624_v40, %v606_v57 }
 0x42a   :  { %649 = vst [vmem:[#allocation13 + $0x28] sm:$0xff] %v639_v19  ;;  %651 = vst [vmem:[#allocation13 + $0x38] sm:$0xff] %v641_v58 }
 0x42b   :  { %650 = vst [vmem:[#allocation13 + $0x30] sm:$0xff] %v640_v59  ;;  %652 = vst [vmem:[#allocation13 + $0x40] sm:$0xff] %v642_v60 }
 0x443   :  { %v565_v0 = vpop.f32.mrb[8].mxu0 }
 0x444   :  { %v602_v1 = vmul.f32 %v592_v62, %v565_v0  ;;  %v752_v2 = vpop.f32.mrb[9].mxu0 }
 0x445   :  { %v568_v3 = vpop.f32.mrb[10].mxu0 }
 0x446   :  { %v638_v4 = vadd.f32 %v628_v63, %v602_v1  ;;  %v607_v5 = vmul.f32 %v592_v62, %v568_v3  ;;  %v753_v6 = vpop.f32.mrb[11].mxu0 }
 0x448   :  { %648 = vst [vmem:[#allocation13 + $0x20] sm:$0xff] %v638_v4  ;;  %v643_v7 = vadd.f32 %v628_v63, %v607_v5 }
 0x44a   :  { %653 = vst [vmem:[#allocation13 + $0x48] sm:$0xff] %v643_v7 }
 0x44b   :  { %913 = shalt.err (!%p910_p10)
}
 0x44c   :  { %s914_s8 = scalar_lea.hbm %s1136_s6, 1280 }
 0x44d   :  { %p915_p11 = scmp.ne.s32.totalorder %s1136_s6, %s914_s8  ;;  %p918_p12 = scmp.lt.u32.totalorder %s914_s8, %s1136_s6 }
 0x44f   :  { %p920_p13 = pnand %p918_p12, %p915_p11 }
 0x451   :  { %923 = shalt.err (!%p920_p13)
}
 0x452   :  { %665 = dma.vmem_to_hbm [thread:$0]  %s660_s24, 1280, %s1136_s6, [#allocation4], %s943_s2, %s943_s2, %s944_s22  }
 0x453   :  { %932 = dma.done.wait [#allocation4], 1280  }
 0x454   :  { %933 = vsyncadd [#allocation4], 4294966016 }
 0x455   :  { %669 = vsyncpa [#allocation3], 1 }
 0x456   :  { %670 = vsyncpa [#allocation6], 1 }
 0x457   :  { %671 = vsyncpa [#allocation9], 1 }
 0x458   :  { %672 = vsyncpa [#allocation12], 1 }
 0x459   :  { %673 = vsyncpa [#allocation4], 1 }

</bundles_post_ra>
